<compile_context>
chip_gen: v7x
topology: tpu7x:2x2x1
jax: 0.10.0
libtpu: 0.0.40
codegen_flags: <defaults>
</compile_context>

<pallas_src>
import jax
import jax.numpy as jnp
from jax.experimental import pallas as pl
from jax.experimental.pallas import tpu as pltpu


def _make_dma_concat_kernel(offsets, widths):
    """Kernel: one HBM->HBM DMA per input into its static output slice."""

    def kernel(*refs):
        n = len(offsets)
        in_refs = refs[:n]
        out_ref = refs[n]
        sems = refs[n + 1]

        copies = []
        # Issue all DMAs first so they overlap across DMA engines...
        for i in range(n):
            off = offsets[i]
            w = widths[i]
            cp = pltpu.make_async_copy(
                in_refs[i],
                out_ref.at[:, pl.ds(off, w)],
                sems.at[i],
            )
            cp.start()
            copies.append(cp)
        # ...then wait on all of them.
        for cp in copies:
            cp.wait()

    return kernel


def pallas_concat(xs, dimension=1):
    """Concatenate a list/tuple of arrays along `dimension` with a Pallas kernel."""
    xs = list(xs)
    assert len(xs) >= 1
    ndim = xs[0].ndim
    dim = dimension % ndim
    dtype = xs[0].dtype

    # Mirror torch.cat shape/dtype requirements.
    base_shape = list(xs[0].shape)
    for x in xs:
        assert x.ndim == ndim
        assert x.dtype == dtype
        for ax in range(ndim):
            if ax != dim:
                assert x.shape[ax] == base_shape[ax], "non-concat dims must match"

    out_shape = list(base_shape)
    out_shape[dim] = sum(int(x.shape[dim]) for x in xs)
    out_shape = tuple(out_shape)

    # Lane-dense flattening: leading dims -> rows, (concat dim + trailing) -> cols.
    lead = 1
    for s in base_shape[:dim]:
        lead *= int(s)
    trail = 1
    for s in base_shape[dim + 1:]:
        trail *= int(s)

    widths_all = [int(x.shape[dim]) * trail for x in xs]
    offsets_all = []
    acc = 0
    for w in widths_all:
        offsets_all.append(acc)
        acc += w
    total_w = acc

    # Drop zero-width inputs (empty along the concat dim) so no zero-size DMAs.
    keep = [i for i, w in enumerate(widths_all) if w > 0]
    if total_w == 0 or lead == 0:
        return jnp.zeros(out_shape, dtype=dtype)

    flat_xs = [xs[i].reshape(lead, widths_all[i]) for i in keep]
    offsets = [offsets_all[i] for i in keep]
    widths = [widths_all[i] for i in keep]

    kernel = _make_dma_concat_kernel(offsets, widths)

    flat_out = pl.pallas_call(
        kernel,
        out_shape=jax.ShapeDtypeStruct((lead, total_w), dtype),
        in_specs=[pl.BlockSpec(memory_space=pl.ANY) for _ in flat_xs],
        out_specs=pl.BlockSpec(memory_space=pl.ANY),
        scratch_shapes=[pltpu.SemaphoreType.DMA((len(flat_xs),))],
        compiler_params=pltpu.CompilerParams(has_side_effects=True),
    )(*flat_xs)

    return flat_out.reshape(out_shape)


class Concat:
    """JAX/Pallas equivalent of the PyTorch Concat module (no parameters)."""

    def __init__(self, dimension=1):
        self.d = dimension

    def __call__(self, x):
        return pallas_concat(x, self.d)


if __name__ == "__main__":
    key = jax.random.PRNGKey(0)
    k1, k2, k3 = jax.random.split(key, 3)

    # NCHW inputs with different channel counts, concat along channels (dim=1).
    x1 = jax.random.normal(k1, (2, 4, 16, 16), dtype=jnp.float32)
    x2 = jax.random.normal(k2, (2, 6, 16, 16), dtype=jnp.float32)
    x3 = jax.random.normal(k3, (2, 2, 16, 16), dtype=jnp.float32)

    module = Concat(dimension=1)
    out = module([x1, x2, x3])
    out = jax.block_until_ready(out)

    ref = jnp.concatenate([x1, x2, x3], axis=1)
    assert out.shape == (2, 12, 16, 16), out.shape
    assert out.dtype == ref.dtype
    assert jnp.array_equal(out, ref), "Pallas concat mismatch vs jnp.concatenate"

    # Trailing-dim concat (dim=-1) to exercise the general path.
    y = pallas_concat([x1, x1], dimension=-1)
    y = jax.block_until_ready(y)
    assert jnp.array_equal(y, jnp.concatenate([x1, x1], axis=-1))

    # Leading-dim concat (dim=0) to exercise lead == 1.
    z = pallas_concat([x1, x2.transpose(0, 1, 2, 3)[:, :4]], dimension=0)
    z = jax.block_until_ready(z)
    assert jnp.array_equal(z, jnp.concatenate([x1, x2[:, :4]], axis=0))

    print("KERNEL_OK")
</pallas_src>

<mosaic_0001>
module attributes {stable_mosaic.version = 11 : i64} {
  func.func @kernel(%arg0: memref<2x1024xf32, #tpu.memory_space<any>>, %arg1: memref<2x1536xf32, #tpu.memory_space<any>>, %arg2: memref<2x512xf32, #tpu.memory_space<any>>, %arg3: memref<2x3072xf32, #tpu.memory_space<any>>, %arg4: memref<3x!tpu.dma_semaphore, #tpu.memory_space<semaphore_mem>>) attributes {dimension_semantics = [], scalar_prefetch = 0 : i64, scratch_operands = 1 : i64, tpu.core_type = #tpu.core_type<tc>} {
    %c0_i32 = arith.constant 0 : i32
    %c0_i32_0 = arith.constant 0 : i32
    %c0_i32_1 = arith.constant 0 : i32
    %0 = tpu.memref_slice %arg3[%c0_i32_0, %c0_i32_1] : memref<2x3072xf32, #tpu.memory_space<any>> -> memref<2x1024xf32, #tpu.memory_space<any>>
    %1 = tpu.memref_slice %arg4[%c0_i32] : memref<3x!tpu.dma_semaphore, #tpu.memory_space<semaphore_mem>> -> memref<1x!tpu.dma_semaphore, #tpu.memory_space<semaphore_mem>>
    %2 = tpu.memref_squeeze %1 : memref<1x!tpu.dma_semaphore, #tpu.memory_space<semaphore_mem>> -> memref<!tpu.dma_semaphore, #tpu.memory_space<semaphore_mem>>
    tpu.enqueue_dma source(%arg0 : memref<2x1024xf32, #tpu.memory_space<any>>) target(%0 : memref<2x1024xf32, #tpu.memory_space<any>>) target_semaphore(%2 : memref<!tpu.dma_semaphore, #tpu.memory_space<semaphore_mem>>)
    %c1_i32 = arith.constant 1 : i32
    %c0_i32_2 = arith.constant 0 : i32
    %c1024_i32 = arith.constant 1024 : i32
    %3 = tpu.memref_slice %arg3[%c0_i32_2, %c1024_i32] : memref<2x3072xf32, #tpu.memory_space<any>> -> memref<2x1536xf32, #tpu.memory_space<any>>
    %4 = tpu.memref_slice %arg4[%c1_i32] : memref<3x!tpu.dma_semaphore, #tpu.memory_space<semaphore_mem>> -> memref<1x!tpu.dma_semaphore, #tpu.memory_space<semaphore_mem>>
    %5 = tpu.memref_squeeze %4 : memref<1x!tpu.dma_semaphore, #tpu.memory_space<semaphore_mem>> -> memref<!tpu.dma_semaphore, #tpu.memory_space<semaphore_mem>>
    tpu.enqueue_dma source(%arg1 : memref<2x1536xf32, #tpu.memory_space<any>>) target(%3 : memref<2x1536xf32, #tpu.memory_space<any>>) target_semaphore(%5 : memref<!tpu.dma_semaphore, #tpu.memory_space<semaphore_mem>>)
    %c2_i32 = arith.constant 2 : i32
    %c0_i32_3 = arith.constant 0 : i32
    %c2560_i32 = arith.constant 2560 : i32
    %6 = tpu.memref_slice %arg3[%c0_i32_3, %c2560_i32] : memref<2x3072xf32, #tpu.memory_space<any>> -> memref<2x512xf32, #tpu.memory_space<any>>
    %7 = tpu.memref_slice %arg4[%c2_i32] : memref<3x!tpu.dma_semaphore, #tpu.memory_space<semaphore_mem>> -> memref<1x!tpu.dma_semaphore, #tpu.memory_space<semaphore_mem>>
    %8 = tpu.memref_squeeze %7 : memref<1x!tpu.dma_semaphore, #tpu.memory_space<semaphore_mem>> -> memref<!tpu.dma_semaphore, #tpu.memory_space<semaphore_mem>>
    tpu.enqueue_dma source(%arg2 : memref<2x512xf32, #tpu.memory_space<any>>) target(%6 : memref<2x512xf32, #tpu.memory_space<any>>) target_semaphore(%8 : memref<!tpu.dma_semaphore, #tpu.memory_space<semaphore_mem>>)
    %c0_i32_4 = arith.constant 0 : i32
    %c0_i32_5 = arith.constant 0 : i32
    %c0_i32_6 = arith.constant 0 : i32
    %9 = tpu.memref_slice %arg3[%c0_i32_5, %c0_i32_6] : memref<2x3072xf32, #tpu.memory_space<any>> -> memref<2x1024xf32, #tpu.memory_space<any>>
    %10 = tpu.memref_slice %arg4[%c0_i32_4] : memref<3x!tpu.dma_semaphore, #tpu.memory_space<semaphore_mem>> -> memref<1x!tpu.dma_semaphore, #tpu.memory_space<semaphore_mem>>
    %11 = tpu.memref_squeeze %10 : memref<1x!tpu.dma_semaphore, #tpu.memory_space<semaphore_mem>> -> memref<!tpu.dma_semaphore, #tpu.memory_space<semaphore_mem>>
    tpu.wait_dma2 semaphore(%11 : memref<!tpu.dma_semaphore, #tpu.memory_space<semaphore_mem>>) src(%arg0 : memref<2x1024xf32, #tpu.memory_space<any>>) dst(%9 : memref<2x1024xf32, #tpu.memory_space<any>>)
    %c1_i32_7 = arith.constant 1 : i32
    %c0_i32_8 = arith.constant 0 : i32
    %c1024_i32_9 = arith.constant 1024 : i32
    %12 = tpu.memref_slice %arg3[%c0_i32_8, %c1024_i32_9] : memref<2x3072xf32, #tpu.memory_space<any>> -> memref<2x1536xf32, #tpu.memory_space<any>>
    %13 = tpu.memref_slice %arg4[%c1_i32_7] : memref<3x!tpu.dma_semaphore, #tpu.memory_space<semaphore_mem>> -> memref<1x!tpu.dma_semaphore, #tpu.memory_space<semaphore_mem>>
    %14 = tpu.memref_squeeze %13 : memref<1x!tpu.dma_semaphore, #tpu.memory_space<semaphore_mem>> -> memref<!tpu.dma_semaphore, #tpu.memory_space<semaphore_mem>>
    tpu.wait_dma2 semaphore(%14 : memref<!tpu.dma_semaphore, #tpu.memory_space<semaphore_mem>>) src(%arg1 : memref<2x1536xf32, #tpu.memory_space<any>>) dst(%12 : memref<2x1536xf32, #tpu.memory_space<any>>)
    %c2_i32_10 = arith.constant 2 : i32
    %c0_i32_11 = arith.constant 0 : i32
    %c2560_i32_12 = arith.constant 2560 : i32
    %15 = tpu.memref_slice %arg3[%c0_i32_11, %c2560_i32_12] : memref<2x3072xf32, #tpu.memory_space<any>> -> memref<2x512xf32, #tpu.memory_space<any>>
    %16 = tpu.memref_slice %arg4[%c2_i32_10] : memref<3x!tpu.dma_semaphore, #tpu.memory_space<semaphore_mem>> -> memref<1x!tpu.dma_semaphore, #tpu.memory_space<semaphore_mem>>
    %17 = tpu.memref_squeeze %16 : memref<1x!tpu.dma_semaphore, #tpu.memory_space<semaphore_mem>> -> memref<!tpu.dma_semaphore, #tpu.memory_space<semaphore_mem>>
    tpu.wait_dma2 semaphore(%17 : memref<!tpu.dma_semaphore, #tpu.memory_space<semaphore_mem>>) src(%arg2 : memref<2x512xf32, #tpu.memory_space<any>>) dst(%15 : memref<2x512xf32, #tpu.memory_space<any>>)
    return
  }
}

</mosaic_0001>

<bundles_post_ra>
// kernel: tpu_custom_call.1
= control target key start
LH: loop header
LB: loop body
LE: loop exit
PB: predicated region body
PF: predicated region fallthrough
CT: control target
= control target key end

     0   :  { %s97_s15 = smov [#allocation2]   ;;  %s98_s16 = smov [#allocation3]   ;;  %s142_s0 = inlined_call_operand.hbm [shape: f32[2,1024], index: 0, kind: input, shape index: {}]   ;;  %s143_s3 = inlined_call_operand.hbm [shape: f32[2,3072], index: 3, kind: output, shape index: {}]   ;;  %s144_s1 = inlined_call_operand.hbm [shape: f32[2,1536], index: 1, kind: input, shape index: {}]   ;;  %s145_s2 = inlined_call_operand.hbm [shape: f32[2,512], index: 2, kind: input, shape index: {}]  }
   0x1   :  { %s21_s14 = scalar_lea.hbm %s143_s3, 256  ;;  %s99_s17 = smov 0  }
   0x2   :  { %20 = dma.general %s142_s0, 256, %s143_s3, %s97_s15, %s98_s16, [#allocation4], %s99_s17, 0  }
   0x3   :  { %s36_s24 = scalar_lea.hbm %s143_s3, 640  ;;  %s100_s25 = smov [#allocation2 + $0x1]  }
   0x4   :  { %s101_s26 = smov [#allocation5]   ;;  %s102_s29 = smov [#allocation2 + $0x2]  }
   0x5   :  { %35 = dma.general %s144_s1, 384, %s21_s14, %s100_s25, %s101_s26, [#allocation6], %s99_s17, 0  }
   0x6   :  { %s103_s30 = smov [#allocation7]  }
   0x7   :  { %50 = dma.general %s145_s2, 128, %s36_s24, %s102_s29, %s103_s30, [#allocation8], %s99_s17, 0  }
   0x8   :  { %91 = dma.done.wait [#allocation2], 256 }
   0x9   :  { %92 = vsyncadd [#allocation2], 4294967040 }
   0xa   :  { %93 = dma.done.wait [#allocation2 + $0x1], 384 }
   0xb   :  { %94 = vsyncadd [#allocation2 + $0x1], 4294966912 }
   0xc   :  { %95 = dma.done.wait [#allocation2 + $0x2], 128 }
   0xd   :  { %96 = vsyncadd [#allocation2 + $0x2], 4294967168 }
   0xe   :  { %61 = vsyncmov [#allocation2] }
  0x11   :  { %s62_s0 = vpop.sfrf %61 }
  0x12   :  { %p81_p0 = scmp.ne.s32.totalorder %s62_s0, 0 }
  0x14   :  { %66 = shalt.err (%p81_p0)  }
  0x15   :  { %68 = vsyncmov [#allocation2 + $0x1] }
  0x18   :  { %s69_s3 = vpop.sfrf %68 }
  0x19   :  { %p82_p1 = scmp.ne.s32.totalorder %s69_s3, 0 }
  0x1b   :  { %73 = shalt.err (%p82_p1)  }
  0x1c   :  { %75 = vsyncmov [#allocation2 + $0x2] }
  0x1f   :  { %s76_s1 = vpop.sfrf %75 }
  0x20   :  { %p83_p2 = scmp.ne.s32.totalorder %s76_s1, 0 }
  0x22   :  { %80 = shalt.err (%p83_p2)  }

</bundles_post_ra>
